<compile_context>
chip_gen: v7x
topology: tpu7x:2x2x1
jax: 0.10.0
libtpu: 0.0.40
codegen_flags: <defaults>
</compile_context>

<pallas_src>
import functools

import numpy as np
import jax
import jax.numpy as jnp
from jax import lax
from jax.experimental import pallas as pl
from jax.experimental.pallas import tpu as pltpu

F1 = 16            # conv1 output channels (-> H of the layer-2 image)
F2 = 4             # conv2 / conv3 output channels
KW2 = 32           # conv2 kernel (2, 32)
KH3, KW3 = 8, 4    # conv3 kernel (8, 4)
PAD2_L = 16        # ZeroPad2d((16, 17, 0, 1)) left pad
BN_EPS = 0.0       # nn.BatchNorm2d(n, False) -> eps = 0


def _derived_dims(T):
    W2 = T + 2                   # conv2 output width (H out is always 16)
    W2p = (W2 - 2) // 4 + 1      # width after MaxPool2d(2, 4)
    W3 = W2p                     # conv3 output width (H out is always 4)
    W3p = (W3 - 4) // 4 + 1      # width after MaxPool2d((2, 4))
    flat = F2 * 2 * W3p          # PyTorch flat_fts
    return W2, W2p, W3, W3p, flat


# ---------------------------------------------------------------------------
# Fused batched kernel (one grid step = B_TILE samples)
# ---------------------------------------------------------------------------
def _eegnet_kernel(x_ref, w1_ref, t1_ref, b2_ref, t2_ref, r3_ref, t3_ref,
                   wf_ref, bf_ref, out_ref, *, B, W3):
    NH3 = F2 * W3   # columns per conv3 output-H row in the (h, k2, w) layout

    def elu(v):
        return jnp.where(v > 0.0, v, jnp.exp(jnp.minimum(v, 0.0)) - 1.0)

    def shift_left(v, k):
        # v[:, i] -> value of v[:, i+k] (circular); wrapped columns are never
        # selected downstream (the folded selection matrices are zero there).
        return jnp.concatenate([v[:, k:], v[:, :k]], axis=1)

    # ---- layer 1: Conv2d(1,16,(1,C)) + BN + ELU (Dropout = eval identity) --
    # Block-diagonal, BN-scaled weights -> rows come out H-major: row = h*B+b.
    h1 = jnp.dot(w1_ref[...], x_ref[...],
                 preferred_element_type=jnp.float32)             # (16B, T)
    h1 = elu(h1 + t1_ref[...])

    # ---- layer 2 lhs: K-concat of the two H taps of the (2,32) kernel.
    # `down` row h*B+b holds h1 row (h+1)*B+b; rows h == 15 take the
    # ZeroPad2d bottom pad row (zeros).
    down = jnp.concatenate(
        [h1[B:, :], jnp.zeros((B, h1.shape[1]), jnp.float32)], axis=0)
    l2 = jnp.concatenate([h1, down], axis=1).astype(jnp.bfloat16)  # (16B, 2T)

    # ---- layer 2: Conv2d(1,4,(2,32)) as ONE banded matmul + BN + ELU -------
    h2 = jnp.dot(l2, b2_ref[...], preferred_element_type=jnp.float32)
    h2 = elu(h2 + t2_ref[...])                                   # (16B, 4*W2)

    # ---- MaxPool2d(2, 4): pairwise W max (its stride-4 column selection is
    # folded into r3) + pairwise H max as contiguous row-block maxes ---------
    cmax = jnp.maximum(h2, shift_left(h2, 1))
    pooled = [jnp.maximum(cmax[(4 * hp) * B:(4 * hp + 1) * B, :],
                          cmax[(4 * hp + 1) * B:(4 * hp + 2) * B, :])
              for hp in range(4)]
    lhs3 = jnp.concatenate(pooled, axis=1).astype(jnp.bfloat16)  # (B, 4*4*W2)

    # ---- layer 3: Conv2d(4,4,(8,4)) + BN shift as ONE matmul (H taps, pads,
    # pool-column selection, BN scale folded into r3); cols ordered (h,k2,w) --
    h3 = jnp.dot(lhs3, r3_ref[...], preferred_element_type=jnp.float32)
    h3 = h3 + t3_ref[...]                                        # (B, 4*F2*W3)

    # ---- MaxPool2d((2,4)) via shifted maxes; window selection folded into wf
    m = jnp.maximum(h3, shift_left(h3, 1))
    m = jnp.maximum(m, shift_left(m, 2))
    m = jnp.maximum(m, shift_left(m, NH3))

    # ---- flatten + fc1: one lane-dense matmul -> unmasked (B, 128) store ---
    # TODO(synk): Dropout(p=0.25) layers are inference-mode identity (no RNG).
    out = jnp.dot(m.astype(jnp.bfloat16), wf_ref[...],
                  preferred_element_type=jnp.float32) + bf_ref[...]
    out_ref[...] = out


# ---------------------------------------------------------------------------
# Synthetic PyTorch-shaped parameters
# ---------------------------------------------------------------------------
def init_raw_params(key, T, C):
    _, _, _, _, flat = _derived_dims(T)
    ks = iter(jax.random.split(key, 24))

    def unif(shape, fan_in):
        b = 1.0 / float(np.sqrt(fan_in))
        return jax.random.uniform(next(ks), shape, jnp.float32, -b, b)

    def bn_stats(n):
        gamma = 1.0 + 0.2 * jax.random.normal(next(ks), (n,), jnp.float32)
        beta = 0.1 * jax.random.normal(next(ks), (n,), jnp.float32)
        mean = 0.1 * jax.random.normal(next(ks), (n,), jnp.float32)
        var = 1.0 + 0.2 * jax.random.uniform(next(ks), (n,), jnp.float32)
        return gamma, beta, mean, var

    return dict(
        w1=unif((F1, 1, 1, C), C), b1=unif((F1,), C),
        w2=unif((F2, 1, 2, KW2), 2 * KW2), b2=unif((F2,), 2 * KW2),
        w3=unif((F2, F2, KH3, KW3), F2 * KH3 * KW3),
        b3=unif((F2,), F2 * KH3 * KW3),
        wfc=unif((2, flat), flat), bfc=unif((2,), flat),
        bn1=bn_stats(F1), bn2=bn_stats(F2), bn3=bn_stats(F2),
    )


# ---------------------------------------------------------------------------
# One-time folding of params into the static kernel operands
# ---------------------------------------------------------------------------
def build_operands(raw, T, C, bt):
    W2, W2p, W3, W3p, _ = _derived_dims(T)
    assert T >= 12 and W3 >= KW3, "time_samples too small for EEGNet pools"
    C2 = F2 * W2
    C3 = 4 * F2 * W3

    w1 = np.asarray(raw["w1"]); b1 = np.asarray(raw["b1"])
    w2 = np.asarray(raw["w2"]); b2 = np.asarray(raw["b2"])
    w3 = np.asarray(raw["w3"]); b3 = np.asarray(raw["b3"])
    wfc = np.asarray(raw["wfc"]); bfc = np.asarray(raw["bfc"])

    def fold(bn, bias):
        g, be, mu, va = (np.asarray(a, np.float64) for a in bn)
        scale = g / np.sqrt(va + BN_EPS)
        shift = be + (np.asarray(bias, np.float64) - mu) * scale
        return scale.astype(np.float32), shift.astype(np.float32)

    s1, t1 = fold(raw["bn1"], b1)
    s2, t2 = fold(raw["bn2"], b2)
    s3, t3 = fold(raw["bn3"], b3)

    # layer-1: BN-scaled weights on a block diagonal so rows come out H-major.
    w1s = w1[:, 0, 0, :] * s1[:, None]                         # (16, C)
    w1blk = np.zeros((bt * F1, bt * C), np.float32)
    for h in range(F1):
        for b in range(bt):
            w1blk[h * bt + b, b * C:(b + 1) * C] = w1s[h]
    t1t = np.repeat(t1, bt).reshape(bt * F1, 1)

    # layer-2 band matrix: ZeroPad2d(16,17,0,1) W pad + BN scale folded in,
    # both H taps concatenated along K.
    B2 = np.zeros((2 * T, C2), np.float32)
    for k in range(F2):
        for dh in range(2):
            for w in range(W2):
                for dw in range(KW2):
                    j = w + dw - PAD2_L
                    if 0 <= j < T:
                        B2[dh * T + j, W2 * k + w] = w2[k, 0, dh, dw] * s2[k]
    t2row = np.repeat(t2, W2).reshape(1, C2)

    # layer-3 band matrix: ZeroPad2d(2,1,4,3), MaxPool(2,4) stride-4 column
    # selection, the 8 H taps and the BN scale all folded in.
    R3 = np.zeros((4 * C2, C3), np.float32)
    for hp in range(4):
        for cin in range(F2):
            for wp in range(W2p):
                row = hp * C2 + W2 * cin + 4 * wp
                for h in range(4):
                    dh = 4 + hp - h                   # always within 0..7
                    for k2 in range(F2):
                        for w in range(W3):
                            dw = wp + 2 - w
                            if 0 <= dw < KW3:
                                R3[row, h * F2 * W3 + k2 * W3 + w] = \
                                    w3[k2, cin, dh, dw] * s3[k2]
    t3row = np.tile(np.repeat(t3, W3), 4).reshape(1, C3)

    # fc1: MaxPool((2,4)) window selection + NCHW flatten order folded into a
    # zero-padded (C3, 128) weight so the output store is lane-dense.
    WF = np.zeros((C3, 128), np.float32)
    for k2 in range(F2):
        for hp2 in range(2):
            for wp2 in range(W3p):
                col = (2 * hp2) * F2 * W3 + k2 * W3 + 4 * wp2
                WF[col, 0:2] = wfc[:, k2 * (2 * W3p) + hp2 * W3p + wp2]
    BF = np.zeros((1, 128), np.float32)
    BF[0, 0:2] = bfc

    return dict(
        w1blk=jnp.asarray(w1blk, jnp.bfloat16),
        t1=jnp.asarray(t1t),
        b2=jnp.asarray(B2, jnp.bfloat16),
        t2=jnp.asarray(t2row),
        r3=jnp.asarray(R3, jnp.bfloat16),
        t3=jnp.asarray(t3row),
        wf=jnp.asarray(WF, jnp.bfloat16),
        bf=jnp.asarray(BF),
    )


# ---------------------------------------------------------------------------
# Forward wrapper: one fused pallas_call, batch-tiled grid.
# ---------------------------------------------------------------------------
def eegnet_forward(x, ops, *, T, C, B_TILE=8):
    N = x.shape[0]
    W2, _, W3, _, _ = _derived_dims(T)
    C2 = F2 * W2
    C3 = 4 * F2 * W3
    n_pad = ((N + B_TILE - 1) // B_TILE) * B_TILE

    # layout plumbing only: (N,1,T,C) -> (n_pad*C, T), rows sample-major.
    x_ct = jnp.transpose(x[:, 0, :, :], (0, 2, 1))               # (N, C, T)
    if n_pad != N:
        x_ct = jnp.pad(x_ct, ((0, n_pad - N), (0, 0), (0, 0)))
    x_flat = x_ct.reshape(n_pad * C, T).astype(jnp.bfloat16)

    kernel = functools.partial(_eegnet_kernel, B=B_TILE, W3=W3)
    out = pl.pallas_call(
        kernel,
        out_shape=jax.ShapeDtypeStruct((n_pad, 128), jnp.float32),
        grid=(n_pad // B_TILE,),
        in_specs=[
            pl.BlockSpec((B_TILE * C, T), lambda i: (i, 0)),          # x tile
            pl.BlockSpec((B_TILE * F1, B_TILE * C), lambda i: (0, 0)),  # w1blk
            pl.BlockSpec((B_TILE * F1, 1), lambda i: (0, 0)),         # t1
            pl.BlockSpec((2 * T, C2), lambda i: (0, 0)),              # b2 band
            pl.BlockSpec((1, C2), lambda i: (0, 0)),                  # t2
            pl.BlockSpec((4 * C2, C3), lambda i: (0, 0)),             # r3 band
            pl.BlockSpec((1, C3), lambda i: (0, 0)),                  # t3
            pl.BlockSpec((C3, 128), lambda i: (0, 0)),                # fc W
            pl.BlockSpec((1, 128), lambda i: (0, 0)),                 # fc bias
        ],
        out_specs=pl.BlockSpec((B_TILE, 128), lambda i: (i, 0)),
        compiler_params=pltpu.CompilerParams(
            dimension_semantics=("parallel",)),
    )(x_flat, ops["w1blk"], ops["t1"], ops["b2"], ops["t2"],
      ops["r3"], ops["t3"], ops["wf"], ops["bf"])
    return out[:N, :2]


# ---------------------------------------------------------------------------
# Pure-JAX f32 reference (PyTorch semantics) for a tolerance check
# ---------------------------------------------------------------------------
def eegnet_reference(x, raw):
    def elu(v):
        return jnp.where(v > 0.0, v, jnp.exp(v) - 1.0)

    def bn(v, stats):
        g, b, mu, va = stats
        inv = g / jnp.sqrt(va + BN_EPS)
        return (v - mu[None, :, None, None]) * inv[None, :, None, None] + \
            b[None, :, None, None]

    def conv(v, w):
        return lax.conv_general_dilated(
            v, w, (1, 1), "VALID",
            dimension_numbers=("NCHW", "OIHW", "NCHW"))

    h = conv(x, raw["w1"]) + raw["b1"][None, :, None, None]
    h = elu(bn(h, raw["bn1"]))
    h = jnp.transpose(h, (0, 3, 1, 2))                       # (N, 1, 16, T)
    h = jnp.pad(h, ((0, 0), (0, 0), (0, 1), (16, 17)))
    h = conv(h, raw["w2"]) + raw["b2"][None, :, None, None]
    h = elu(bn(h, raw["bn2"]))
    h = lax.reduce_window(h, -jnp.inf, lax.max,
                          (1, 1, 2, 2), (1, 1, 4, 4), "VALID")
    h = jnp.pad(h, ((0, 0), (0, 0), (4, 3), (2, 1)))
    h = conv(h, raw["w3"]) + raw["b3"][None, :, None, None]
    h = bn(h, raw["bn3"])
    h = lax.reduce_window(h, -jnp.inf, lax.max,
                          (1, 1, 2, 4), (1, 1, 2, 4), "VALID")
    h = h.reshape(h.shape[0], -1)
    return h @ raw["wfc"].T + raw["bfc"]


if __name__ == "__main__":
    key = jax.random.PRNGKey(0)
    k_param, k_input = jax.random.split(key)

    time_samples, channels, batch = 16, 4, 2      # small EEGNet config
    B_TILE = 8

    raw = init_raw_params(k_param, time_samples, channels)
    ops = build_operands(raw, time_samples, channels, B_TILE)

    # PyTorch-style input: (N, 1, time_samples, channels)
    x = jax.random.normal(k_input, (batch, 1, time_samples, channels),
                          jnp.float32)

    fwd = jax.jit(functools.partial(eegnet_forward, T=time_samples,
                                    C=channels, B_TILE=B_TILE))
    out = jax.block_until_ready(fwd(x, ops))

    assert out.shape == (batch, 2), out.shape
    assert bool(jnp.all(jnp.isfinite(out)))

    ref = eegnet_reference(x, raw)
    assert bool(jnp.allclose(out, ref, atol=5e-2, rtol=5e-2)), (
        np.asarray(out), np.asarray(ref))

    print("KERNEL_OK")
</pallas_src>

<mosaic_0001>
module attributes {stable_mosaic.version = 11 : i64} {
  func.func @_eegnet_kernel(%arg0: i32, %arg1: memref<32x16xbf16, #tpu.memory_space<vmem>>, %arg2: memref<128x32xbf16, #tpu.memory_space<vmem>>, %arg3: memref<128x1xf32, #tpu.memory_space<vmem>>, %arg4: memref<32x72xbf16, #tpu.memory_space<vmem>>, %arg5: memref<1x72xf32, #tpu.memory_space<vmem>>, %arg6: memref<288x80xbf16, #tpu.memory_space<vmem>>, %arg7: memref<1x80xf32, #tpu.memory_space<vmem>>, %arg8: memref<80x128xbf16, #tpu.memory_space<vmem>>, %arg9: memref<1x128xf32, #tpu.memory_space<vmem>>, %arg10: memref<8x128xf32, #tpu.memory_space<vmem>>) attributes {dimension_semantics = [#tpu.dimension_semantics<parallel>], iteration_bounds = array<i64: 1>, scalar_prefetch = 0 : i64, scratch_operands = 0 : i64, tpu.core_type = #tpu.core_type<tc>, window_params = [{transform_indices = @transform_0, window_bounds = array<i64: 32, 16>}, {pipeline_mode = #tpu.pipeline_mode<synchronous>, transform_indices = @transform_1, window_bounds = array<i64: 128, 32>}, {pipeline_mode = #tpu.pipeline_mode<synchronous>, transform_indices = @transform_2, window_bounds = array<i64: 128, 1>}, {pipeline_mode = #tpu.pipeline_mode<synchronous>, transform_indices = @transform_3, window_bounds = array<i64: 32, 72>}, {pipeline_mode = #tpu.pipeline_mode<synchronous>, transform_indices = @transform_4, window_bounds = array<i64: 1, 72>}, {pipeline_mode = #tpu.pipeline_mode<synchronous>, transform_indices = @transform_5, window_bounds = array<i64: 288, 80>}, {pipeline_mode = #tpu.pipeline_mode<synchronous>, transform_indices = @transform_6, window_bounds = array<i64: 1, 80>}, {pipeline_mode = #tpu.pipeline_mode<synchronous>, transform_indices = @transform_7, window_bounds = array<i64: 80, 128>}, {pipeline_mode = #tpu.pipeline_mode<synchronous>, transform_indices = @transform_8, window_bounds = array<i64: 1, 128>}, {transform_indices = @transform_9, window_bounds = array<i64: 8, 128>}]} {
    %c0 = arith.constant 0 : index
    %c0_0 = arith.constant 0 : index
    %0 = vector.load %arg2[%c0, %c0_0] : memref<128x32xbf16, #tpu.memory_space<vmem>>, vector<128x32xbf16>
    %c0_1 = arith.constant 0 : index
    %c0_2 = arith.constant 0 : index
    %1 = vector.load %arg1[%c0_1, %c0_2] : memref<32x16xbf16, #tpu.memory_space<vmem>>, vector<32x16xbf16>
    %cst = arith.constant dense<0.000000e+00> : vector<128x16xf32>
    %2 = tpu.matmul %0, %1, %cst {dimension_numbers = #tpu.dot_dimension_numbers<[1], [0], [0], [1], [0, 0, 1, 1], [], []>} : vector<128x32xbf16>, vector<32x16xbf16>, vector<128x16xf32> -> vector<128x16xf32>
    %c0_3 = arith.constant 0 : index
    %c0_4 = arith.constant 0 : index
    %3 = vector.load %arg3[%c0_3, %c0_4] : memref<128x1xf32, #tpu.memory_space<vmem>>, vector<128x1xf32>
    %4 = vector.broadcast %3 : vector<128x1xf32> to vector<128x16xf32>
    %5 = arith.addf %2, %4 : vector<128x16xf32>
    %cst_5 = arith.constant 0.000000e+00 : f32
    %6 = vector.broadcast %cst_5 : f32 to vector<128x16xf32>
    %7 = arith.cmpf ogt, %5, %6 : vector<128x16xf32>
    %cst_6 = arith.constant 0.000000e+00 : f32
    %8 = vector.broadcast %cst_6 : f32 to vector<128x16xf32>
    %9 = arith.minimumf %5, %8 : vector<128x16xf32>
    %10 = math.exp %9 : vector<128x16xf32>
    %cst_7 = arith.constant 1.000000e+00 : f32
    %11 = vector.broadcast %cst_7 : f32 to vector<128x16xf32>
    %12 = arith.subf %10, %11 : vector<128x16xf32>
    %13 = arith.select %7, %5, %12 : vector<128x16xi1>, vector<128x16xf32>
    %14 = vector.extract_strided_slice %13 {offsets = [8, 0], sizes = [120, 16], strides = [1, 1]} : vector<128x16xf32> to vector<120x16xf32>
    %cst_8 = arith.constant 0.000000e+00 : f32
    %15 = vector.broadcast %cst_8 : f32 to vector<8x16xf32>
    %16 = tpu.concatenate %14, %15 in 0 : vector<120x16xf32>, vector<8x16xf32> -> vector<128x16xf32>
    %17 = tpu.concatenate %13, %16 in 1 : vector<128x16xf32>, vector<128x16xf32> -> vector<128x32xf32>
    %18 = arith.truncf %17 : vector<128x32xf32> to vector<128x32xbf16>
    %c0_9 = arith.constant 0 : index
    %c0_10 = arith.constant 0 : index
    %19 = vector.load %arg4[%c0_9, %c0_10] : memref<32x72xbf16, #tpu.memory_space<vmem>>, vector<32x72xbf16>
    %cst_11 = arith.constant dense<0.000000e+00> : vector<128x72xf32>
    %20 = tpu.matmul %18, %19, %cst_11 {dimension_numbers = #tpu.dot_dimension_numbers<[1], [0], [0], [1], [0, 0, 1, 1], [], []>} : vector<128x32xbf16>, vector<32x72xbf16>, vector<128x72xf32> -> vector<128x72xf32>
    %c0_12 = arith.constant 0 : index
    %c0_13 = arith.constant 0 : index
    %21 = vector.load %arg5[%c0_12, %c0_13] : memref<1x72xf32, #tpu.memory_space<vmem>>, vector<1x72xf32>
    %22 = vector.broadcast %21 : vector<1x72xf32> to vector<128x72xf32>
    %23 = arith.addf %20, %22 : vector<128x72xf32>
    %cst_14 = arith.constant 0.000000e+00 : f32
    %24 = vector.broadcast %cst_14 : f32 to vector<128x72xf32>
    %25 = arith.cmpf ogt, %23, %24 : vector<128x72xf32>
    %cst_15 = arith.constant 0.000000e+00 : f32
    %26 = vector.broadcast %cst_15 : f32 to vector<128x72xf32>
    %27 = arith.minimumf %23, %26 : vector<128x72xf32>
    %28 = math.exp %27 : vector<128x72xf32>
    %cst_16 = arith.constant 1.000000e+00 : f32
    %29 = vector.broadcast %cst_16 : f32 to vector<128x72xf32>
    %30 = arith.subf %28, %29 : vector<128x72xf32>
    %31 = arith.select %25, %23, %30 : vector<128x72xi1>, vector<128x72xf32>
    %32 = vector.extract_strided_slice %31 {offsets = [0, 1], sizes = [128, 71], strides = [1, 1]} : vector<128x72xf32> to vector<128x71xf32>
    %33 = vector.extract_strided_slice %31 {offsets = [0, 0], sizes = [128, 1], strides = [1, 1]} : vector<128x72xf32> to vector<128x1xf32>
    %34 = tpu.concatenate %32, %33 in 1 : vector<128x71xf32>, vector<128x1xf32> -> vector<128x72xf32>
    %35 = arith.maximumf %31, %34 : vector<128x72xf32>
    %36 = vector.extract_strided_slice %35 {offsets = [0, 0], sizes = [8, 72], strides = [1, 1]} : vector<128x72xf32> to vector<8x72xf32>
    %37 = vector.extract_strided_slice %35 {offsets = [8, 0], sizes = [8, 72], strides = [1, 1]} : vector<128x72xf32> to vector<8x72xf32>
    %38 = arith.maximumf %36, %37 : vector<8x72xf32>
    %39 = vector.extract_strided_slice %35 {offsets = [32, 0], sizes = [8, 72], strides = [1, 1]} : vector<128x72xf32> to vector<8x72xf32>
    %40 = vector.extract_strided_slice %35 {offsets = [40, 0], sizes = [8, 72], strides = [1, 1]} : vector<128x72xf32> to vector<8x72xf32>
    %41 = arith.maximumf %39, %40 : vector<8x72xf32>
    %42 = vector.extract_strided_slice %35 {offsets = [64, 0], sizes = [8, 72], strides = [1, 1]} : vector<128x72xf32> to vector<8x72xf32>
    %43 = vector.extract_strided_slice %35 {offsets = [72, 0], sizes = [8, 72], strides = [1, 1]} : vector<128x72xf32> to vector<8x72xf32>
    %44 = arith.maximumf %42, %43 : vector<8x72xf32>
    %45 = vector.extract_strided_slice %35 {offsets = [96, 0], sizes = [8, 72], strides = [1, 1]} : vector<128x72xf32> to vector<8x72xf32>
    %46 = vector.extract_strided_slice %35 {offsets = [104, 0], sizes = [8, 72], strides = [1, 1]} : vector<128x72xf32> to vector<8x72xf32>
    %47 = arith.maximumf %45, %46 : vector<8x72xf32>
    %48 = tpu.concatenate %38, %41, %44, %47 in 1 : vector<8x72xf32>, vector<8x72xf32>, vector<8x72xf32>, vector<8x72xf32> -> vector<8x288xf32>
    %49 = arith.truncf %48 : vector<8x288xf32> to vector<8x288xbf16>
    %c0_17 = arith.constant 0 : index
    %c0_18 = arith.constant 0 : index
    %50 = vector.load %arg6[%c0_17, %c0_18] : memref<288x80xbf16, #tpu.memory_space<vmem>>, vector<288x80xbf16>
    %cst_19 = arith.constant dense<0.000000e+00> : vector<8x80xf32>
    %51 = tpu.matmul %49, %50, %cst_19 {dimension_numbers = #tpu.dot_dimension_numbers<[1], [0], [0], [1], [0, 0, 1, 1], [], []>} : vector<8x288xbf16>, vector<288x80xbf16>, vector<8x80xf32> -> vector<8x80xf32>
    %c0_20 = arith.constant 0 : index
    %c0_21 = arith.constant 0 : index
    %52 = vector.load %arg7[%c0_20, %c0_21] : memref<1x80xf32, #tpu.memory_space<vmem>>, vector<1x80xf32>
    %53 = vector.broadcast %52 : vector<1x80xf32> to vector<8x80xf32>
    %54 = arith.addf %51, %53 : vector<8x80xf32>
    %55 = vector.extract_strided_slice %54 {offsets = [0, 1], sizes = [8, 79], strides = [1, 1]} : vector<8x80xf32> to vector<8x79xf32>
    %56 = vector.extract_strided_slice %54 {offsets = [0, 0], sizes = [8, 1], strides = [1, 1]} : vector<8x80xf32> to vector<8x1xf32>
    %57 = tpu.concatenate %55, %56 in 1 : vector<8x79xf32>, vector<8x1xf32> -> vector<8x80xf32>
    %58 = arith.maximumf %54, %57 : vector<8x80xf32>
    %59 = vector.extract_strided_slice %58 {offsets = [0, 2], sizes = [8, 78], strides = [1, 1]} : vector<8x80xf32> to vector<8x78xf32>
    %60 = vector.extract_strided_slice %58 {offsets = [0, 0], sizes = [8, 2], strides = [1, 1]} : vector<8x80xf32> to vector<8x2xf32>
    %61 = tpu.concatenate %59, %60 in 1 : vector<8x78xf32>, vector<8x2xf32> -> vector<8x80xf32>
    %62 = arith.maximumf %58, %61 : vector<8x80xf32>
    %63 = vector.extract_strided_slice %62 {offsets = [0, 20], sizes = [8, 60], strides = [1, 1]} : vector<8x80xf32> to vector<8x60xf32>
    %64 = vector.extract_strided_slice %62 {offsets = [0, 0], sizes = [8, 20], strides = [1, 1]} : vector<8x80xf32> to vector<8x20xf32>
    %65 = tpu.concatenate %63, %64 in 1 : vector<8x60xf32>, vector<8x20xf32> -> vector<8x80xf32>
    %66 = arith.maximumf %62, %65 : vector<8x80xf32>
    %67 = arith.truncf %66 : vector<8x80xf32> to vector<8x80xbf16>
    %c0_22 = arith.constant 0 : index
    %c0_23 = arith.constant 0 : index
    %68 = vector.load %arg8[%c0_22, %c0_23] : memref<80x128xbf16, #tpu.memory_space<vmem>>, vector<80x128xbf16>
    %cst_24 = arith.constant dense<0.000000e+00> : vector<8x128xf32>
    %69 = tpu.matmul %67, %68, %cst_24 {dimension_numbers = #tpu.dot_dimension_numbers<[1], [0], [0], [1], [0, 0, 1, 1], [], []>} : vector<8x80xbf16>, vector<80x128xbf16>, vector<8x128xf32> -> vector<8x128xf32>
    %c0_25 = arith.constant 0 : index
    %c0_26 = arith.constant 0 : index
    %70 = vector.load %arg9[%c0_25, %c0_26] : memref<1x128xf32, #tpu.memory_space<vmem>>, vector<1x128xf32>
    %71 = vector.broadcast %70 : vector<1x128xf32> to vector<8x128xf32>
    %72 = arith.addf %69, %71 : vector<8x128xf32>
    %c0_27 = arith.constant 0 : index
    %c0_28 = arith.constant 0 : index
    %73 = vector.load %arg10[%c0_27, %c0_28] : memref<8x128xf32, #tpu.memory_space<vmem>>, vector<8x128xf32>
    tpu.vector_store %arg10[%c0_27, %c0_28], %72 {strides = array<i32>} : memref<8x128xf32, #tpu.memory_space<vmem>>, vector<8x128xf32>,
    return
  }
  func.func @transform_0(%arg0: i32) -> (i32, i32) {
    %c0_i32 = arith.constant 0 : i32
    %c0_i32_0 = arith.constant 0 : i32
    return %arg0, %c0_i32 : i32, i32
  }
  func.func @transform_1(%arg0: i32) -> (i32, i32) {
    %c0_i32 = arith.constant 0 : i32
    %c0_i32_0 = arith.constant 0 : i32
    %c0_i32_1 = arith.constant 0 : i32
    return %c0_i32, %c0_i32_0 : i32, i32
  }
  func.func @transform_2(%arg0: i32) -> (i32, i32) {
    %c0_i32 = arith.constant 0 : i32
    %c0_i32_0 = arith.constant 0 : i32
    %c0_i32_1 = arith.constant 0 : i32
    return %c0_i32, %c0_i32_0 : i32, i32
  }
  func.func @transform_3(%arg0: i32) -> (i32, i32) {
    %c0_i32 = arith.constant 0 : i32
    %c0_i32_0 = arith.constant 0 : i32
    %c0_i32_1 = arith.constant 0 : i32
    return %c0_i32, %c0_i32_0 : i32, i32
  }
  func.func @transform_4(%arg0: i32) -> (i32, i32) {
    %c0_i32 = arith.constant 0 : i32
    %c0_i32_0 = arith.constant 0 : i32
    %c0_i32_1 = arith.constant 0 : i32
    return %c0_i32, %c0_i32_0 : i32, i32
  }
  func.func @transform_5(%arg0: i32) -> (i32, i32) {
    %c0_i32 = arith.constant 0 : i32
    %c0_i32_0 = arith.constant 0 : i32
    %c0_i32_1 = arith.constant 0 : i32
    return %c0_i32, %c0_i32_0 : i32, i32
  }
  func.func @transform_6(%arg0: i32) -> (i32, i32) {
    %c0_i32 = arith.constant 0 : i32
    %c0_i32_0 = arith.constant 0 : i32
    %c0_i32_1 = arith.constant 0 : i32
    return %c0_i32, %c0_i32_0 : i32, i32
  }
  func.func @transform_7(%arg0: i32) -> (i32, i32) {
    %c0_i32 = arith.constant 0 : i32
    %c0_i32_0 = arith.constant 0 : i32
    %c0_i32_1 = arith.constant 0 : i32
    return %c0_i32, %c0_i32_0 : i32, i32
  }
  func.func @transform_8(%arg0: i32) -> (i32, i32) {
    %c0_i32 = arith.constant 0 : i32
    %c0_i32_0 = arith.constant 0 : i32
    %c0_i32_1 = arith.constant 0 : i32
    return %c0_i32, %c0_i32_0 : i32, i32
  }
  func.func @transform_9(%arg0: i32) -> (i32, i32) {
    %c0_i32 = arith.constant 0 : i32
    %c0_i32_0 = arith.constant 0 : i32
    return %arg0, %c0_i32 : i32, i32
  }
}

</mosaic_0001>

<bundles_post_ra>
// kernel: eegnet_forward.1
= control target key start
LH: loop header
LB: loop body
LE: loop exit
PB: predicated region body
PF: predicated region fallthrough
CT: control target
= control target key end

     0   :  { %v1521_v1 = vmov 0   ;;  %vm201_vm0 = vcmask 261120   ;;  %v1522_v27 = vmov 0.0   ;;  %s1525_s20 = smov 71   ;;  %s1526_s27 = smov 72   ;;  %s2002_s0 = inlined_call_operand.vmem [shape: bf16[32,16], index: 0, kind: input, shape index: {}]   ;;  %s2003_s1 = inlined_call_operand.vmem [shape: bf16[128,32], index: 1, kind: input, shape index: {}]   ;;  %s2004_s2 = inlined_call_operand.vmem [shape: f32[128,1], index: 2, kind: input, shape index: {}]   ;;  %s2005_s3 = inlined_call_operand.vmem [shape: bf16[32,72], index: 3, kind: input, shape index: {}]   ;;  %s2006_s4 = inlined_call_operand.vmem [shape: f32[1,72], index: 4, kind: input, shape index: {}]   ;;  %s2007_s5 = inlined_call_operand.vmem [shape: bf16[288,80], index: 5, kind: input, shape index: {}]   ;;  %s2008_s6 = inlined_call_operand.vmem [shape: f32[1,80], index: 6, kind: input, shape index: {}]   ;;  %s2009_s7 = inlined_call_operand.vmem [shape: bf16[80,128], index: 7, kind: input, shape index: {}]   ;;  %s2010_s8 = inlined_call_operand.vmem [shape: f32[1,128], index: 8, kind: input, shape index: {}]   ;;  %s2011_s9 = inlined_call_operand.vmem [shape: f32[8,128], index: 9, kind: output, shape index: {}]  }
   0x1   :  { %v1438_v0 = vld [vmem:[%s2002_s0] sm:$0xff]   ;;  %1357 = vset.pattern.permute.xlu1 %v1521_v1  ;;  %1356 = vset.pattern.permute.xlu0 %v1521_v1  ;;  %v1439_v2 = vld [vmem:[%s2002_s0 + $0x8] sm:$0xff]   ;;  %v1442_v5 = vld [vmem:[%s2003_s1 + $0x10] sm:$0xff]   ;;  %s1528_s30 = smov 88   ;;  %s1531_s18 = smov 126  }
   0x2   :  { %1281 = vmatprep.subr.bf16.mxu0 %v1438_v0  ;;  %v1440_v3 = vld [vmem:[%s2003_s1] sm:$0xff]   ;;  %v1441_v4 = vld [vmem:[%s2003_s1 + $0x8] sm:$0xff]   ;;  %v56_v6 = vld [vmem:[%s2004_s2 + $0x18] sm:$0xff]  ;;  %s1532_s22 = smov 60   ;;  %s1533_s23 = smov 108  }
   0x3   :  { %1282 = vmatpush3.bf16.msra.mxu0 %v1438_v0  ;;  %1285 = vmatprep.mubr.msk.bf16.mxu0 %vm201_vm0, %v1440_v3  ;;  %v54_v7 = vld [vmem:[%s2004_s2 + $0x8] sm:$0xff]  ;;  %v57_v8 = vld [vmem:[%s2004_s2 + $0x20] sm:$0xff]  ;;  %v55_v9 = vld [vmem:[%s2004_s2 + $0x10] sm:$0xff] }
   0x4   :  { %1283 = vmatprep.subr.bf16.mxu0 %v1439_v2  ;;  %86 = vperm.xlu1 %1357, %v56_v6   ;;  %v1443_v10 = vld [vmem:[%s2003_s1 + $0x18] sm:$0xff]   ;;  %v1444_v11 = vld [vmem:[%s2003_s1 + $0x20] sm:$0xff]   ;;  %v59_v12 = vld [vmem:[%s2004_s2 + $0x30] sm:$0xff] }
   0x5   :  { %76 = vperm.xlu0 %1356, %v54_v7   ;;  %v58_v13 = vld [vmem:[%s2004_s2 + $0x28] sm:$0xff]  ;;  %v61_v14 = vld [vmem:[%s2004_s2 + $0x40] sm:$0xff]  ;;  %v60_v15 = vld [vmem:[%s2004_s2 + $0x38] sm:$0xff] }
   0x6   :  { %v1445_v16 = vld [vmem:[%s2003_s1 + $0x28] sm:$0xff]   ;;  %v1446_v17 = vld [vmem:[%s2003_s1 + $0x30] sm:$0xff]   ;;  %v65_v20 = vld [vmem:[%s2004_s2 + $0x60] sm:$0xff] }
   0x7   :  { %1284 = vmatpush3.bf16.msra.mxu0 %v1439_v2  ;;  %v63_v18 = vld [vmem:[%s2004_s2 + $0x50] sm:$0xff]  ;;  %v62_v19 = vld [vmem:[%s2004_s2 + $0x48] sm:$0xff]  ;;  %v64_v21 = vld [vmem:[%s2004_s2 + $0x58] sm:$0xff] }
   0x8   :  { %91 = vperm.xlu1 %1357, %v57_v8   ;;  %v1447_v22 = vld [vmem:[%s2003_s1 + $0x38] sm:$0xff]   ;;  %v67_v23 = vld [vmem:[%s2004_s2 + $0x70] sm:$0xff]  ;;  %v66_v24 = vld [vmem:[%s2004_s2 + $0x68] sm:$0xff]  ;;  %1329 = vmatprep.subr.bf16.mxu0 %v1522_v27 }
   0x9   :  { %81 = vperm.xlu0 %1356, %v55_v9   ;;  %v53_v25 = vld [vmem:[%s2004_s2] sm:$0xff]  ;;  %v68_v26 = vld [vmem:[%s2004_s2 + $0x78] sm:$0xff] }
   0xa   :  { %1286 = vmatmul.mubr.msk.bf16.vlgmr.msra.gmra.mrb[0].mxu0 %vm201_vm0, %v1441_v4  ;;  %v1448_v3 = vld [vmem:[%s2005_s3] sm:$0xff]  }
   0xb   :  { %1289 = vmatprep.mubr.msk.bf16.mxu0 %vm201_vm0, %v1442_v5  ;;  %1301 = vmatprep.subr.bf16.mxu1 %v1448_v3 }
   0xc   :  { %101 = vperm.xlu1 %1357, %v59_v12   ;;  %1302 = vmatpush3.bf16.msra.mxu1 %v1448_v3 }
   0xd   :  { %96 = vperm.xlu0 %1356, %v58_v13  }
  0x10   :  { %111 = vperm.xlu1 %1357, %v61_v14  }
  0x11   :  { %106 = vperm.xlu0 %1356, %v60_v15  }
  0x12   :  { %1290 = vmatmul.mubr.msk.bf16.gmra.mrb[4].mxu0 %vm201_vm0, %v1443_v10 }
  0x13   :  { %1293 = vmatprep.mubr.msk.bf16.mxu0 %vm201_vm0, %v1444_v11 }
  0x14   :  { %121 = vperm.xlu1 %1357, %v63_v18  }
  0x15   :  { %116 = vperm.xlu0 %1356, %v62_v19  }
  0x18   :  { %131 = vperm.xlu1 %1357, %v65_v20  }
  0x19   :  { %126 = vperm.xlu0 %1356, %v64_v21  }
  0x1a   :  { %1294 = vmatmul.mubr.msk.bf16.gmra.mrb[8].mxu0 %vm201_vm0, %v1445_v16 }
  0x1b   :  { %1297 = vmatprep.mubr.msk.bf16.mxu0 %vm201_vm0, %v1446_v17 }
  0x1c   :  { %141 = vperm.xlu1 %1357, %v67_v23  }
  0x1d   :  { %136 = vperm.xlu0 %1356, %v66_v24  }
  0x20   :  { %71 = vperm.xlu1 %1357, %v53_v25   ;;  %v1449_v25 = vld [vmem:[%s2005_s3 + $0x8] sm:$0xff]   ;;  %s1523_s3 = smov 16  }
  0x21   :  { %146 = vperm.xlu0 %1356, %v68_v26   ;;  %1303 = vmatprep.subr.bf16.mxu1 %v1449_v25 }
  0x22   :  { %1298 = vmatmul.mubr.msk.bf16.gmra.mrb[12].mxu0 %vm201_vm0, %v1447_v22  ;;  %1304 = vmatpush3.bf16.msra.mxu1 %v1449_v25 }
  0x83   :  { %v87_v29 = vpop.permute.xlu1 %86 }
  0x84   :  { %v77_v28 = vpop.permute.xlu0 %76 }
  0x87   :  { %v92_v31 = vpop.permute.xlu1 %91 }
  0x88   :  { %v82_v30 = vpop.permute.xlu0 %81 }
  0x8b   :  { %v102_v33 = vpop.permute.xlu1 %101 }
  0x8c   :  { %v97_v32 = vpop.permute.xlu0 %96 }
  0x8f   :  { %v112_v45 = vpop.permute.xlu1 %111 }
  0x90   :  { %v107_v37 = vpop.permute.xlu0 %106 }
  0x93   :  { %v122_v58 = vpop.permute.xlu1 %121 }
  0x94   :  { %v117_v47 = vpop.permute.xlu0 %116 }
  0x97   :  { %v132_v9 = vpop.permute.xlu1 %131 }
  0x98   :  { %v127_v63 = vpop.permute.xlu0 %126 }
  0x9c   :  { %v137_v17 = vpop.permute.xlu0 %136 }
  0xdd   :  { %v1287_v34 = vpop.f32.mrb[0].mxu0 }
  0xde   :  { %v1671_v35 = vadd.f32 %v1287_v34, %v82_v30  ;;  %v1673_v36 = vpop.f32.mrb[1].mxu0  ;;  %v142_v30 = vpop.permute.xlu1 %141 }
  0xdf   :  { %v1288_v38 = vpop.f32.mrb[2].mxu0 }
  0xe0   :  { %v341_v39 = vmin.f32 %v1671_v35, 0.0  ;;  %v1676_v40 = vadd.f32 %v1288_v38, %v87_v29  ;;  %v263_v41 = vpop.f32.mrb[3].mxu0  ;;  %vm325_vm1 = vcmp.gt.f32.partialorder %v1671_v35, 0.0 }
  0xe1   :  { %v1678_v42 = vadd.f32 %v263_v41, %v77_v28 }
  0xe2   :  { %v359_v43 = vmul.f32 1.442695, %v341_v39  ;;  %v342_v44 = vmin.f32 %v1676_v40, 0.0  ;;  %vm326_vm3 = vcmp.gt.f32.partialorder %v1676_v40, 0.0 }
  0xe3   :  { %v340_v46 = vmin.f32 %v1678_v42, 0.0  ;;  %vm324_vm2 = vcmp.gt.f32.partialorder %v1678_v42, 0.0 }
  0xe4   :  { %1473 = vpow2.f32 %v359_v43  ;;  %v361_v50 = vmul.f32 1.442695, %v342_v44 }
  0xe5   :  { %v357_v48 = vmul.f32 1.442695, %v340_v46  ;;  %v1291_v49 = vpop.f32.mrb[4].mxu0 }
  0xe6   :  { %v1682_v51 = vadd.f32 %v1291_v49, %v102_v33  ;;  %v276_v52 = vpop.f32.mrb[5].mxu0 }
  0xe7   :  { %1475 = vpow2.f32 %v357_v48  ;;  %v1684_v53 = vadd.f32 %v276_v52, %v92_v31  ;;  %v1292_v54 = vpop.f32.mrb[6].mxu0 }
  0xe8   :  { %v345_v55 = vmin.f32 %v1682_v51, 0.0  ;;  %v1687_v56 = vadd.f32 %v1292_v54, %v107_v37  ;;  %v279_v57 = vpop.f32.mrb[7].mxu0  ;;  %1477 = vpow2.f32 %v361_v50  ;;  %vm329_vm4 = vcmp.gt.f32.partialorder %v1682_v51, 0.0 }
  0xe9   :  { %v343_v59 = vmin.f32 %v1684_v53, 0.0  ;;  %v1690_v60 = vadd.f32 %v279_v57, %v97_v32  ;;  %vm327_vm5 = vcmp.gt.f32.partialorder %v1684_v53, 0.0 }
  0xea   :  { %v367_v61 = vmul.f32 1.442695, %v345_v55  ;;  %v346_v62 = vmin.f32 %v1687_v56, 0.0  ;;  %vm330_vm7 = vcmp.gt.f32.partialorder %v1687_v56, 0.0 }
  0xeb   :  { %v363_v0 = vmul.f32 1.442695, %v343_v59  ;;  %v344_v1 = vmin.f32 %v1690_v60, 0.0  ;;  %vm328_vm6 = vcmp.gt.f32.partialorder %v1690_v60, 0.0 }
  0xec   :  { %1479 = vpow2.f32 %v367_v61  ;;  %v369_v2 = vmul.f32 1.442695, %v346_v62 }
  0xed   :  { %1481 = vpow2.f32 %v363_v0  ;;  %v365_v4 = vmul.f32 1.442695, %v344_v1  ;;  %v1295_v5 = vpop.f32.mrb[8].mxu0 }
  0xee   :  { %v1474_v6 = vpop.eup %1473  ;;  %v1697_v7 = vadd.f32 %v1295_v5, %v122_v58  ;;  %v292_v8 = vpop.f32.mrb[9].mxu0 }
  0xef   :  { %1483 = vpow2.f32 %v365_v4  ;;  %v1699_v10 = vadd.f32 %v292_v8, %v112_v45  ;;  %v1296_v11 = vpop.f32.mrb[10].mxu0  ;;  %v1170_v12 = vadd.f32 -1.0, %v1474_v6 }
  0xf0   :  { %v349_v13 = vmin.f32 %v1697_v7, 0.0  ;;  %v1702_v14 = vadd.f32 %v1296_v11, %v127_v63  ;;  %v295_v15 = vpop.f32.mrb[11].mxu0  ;;  %1485 = vpow2.f32 %v369_v2  ;;  %vm333_vm9 = vcmp.gt.f32.partialorder %v1697_v7, 0.0 }
  0xf1   :  { %v1476_v16 = vpop.eup %1475  ;;  %v347_v18 = vmin.f32 %v1699_v10, 0.0  ;;  %v1705_v19 = vadd.f32 %v295_v15, %v117_v47  ;;  %v1718_v29 = vsel %vm325_vm1, %v1671_v35, %v1170_v12  ;;  %v147_v35 = vpop.permute.xlu0 %146  ;;  %vm331_vm8 = vcmp.gt.f32.partialorder %v1699_v10, 0.0 }
  0xf2   :  { %v1169_v20 = vadd.f32 -1.0, %v1476_v16  ;;  %v375_v21 = vmul.f32 1.442695, %v349_v13  ;;  %v350_v22 = vmin.f32 %v1702_v14, 0.0  ;;  %v1478_v26 = vpop.eup %1477  ;;  %vm334_vm11 = vcmp.gt.f32.partialorder %v1702_v14, 0.0 }
  0xf3   :  { %v371_v23 = vmul.f32 1.442695, %v347_v18  ;;  %v348_v24 = vmin.f32 %v1705_v19, 0.0  ;;  %vm332_vm10 = vcmp.gt.f32.partialorder %v1705_v19, 0.0  ;;  %vm483_vm1 = vcmask 130048  }
  0xf4   :  { %1487 = vpow2.f32 %v375_v21  ;;  %v1715_v28 = vsel %vm324_vm2, %v1678_v42, %v1169_v20  ;;  %v377_v31 = vmul.f32 1.442695, %v350_v22  ;;  %v1171_v42 = vadd.f32 -1.0, %v1478_v26 }
  0xf5   :  { %1489 = vpow2.f32 %v371_v23  ;;  %v373_v32 = vmul.f32 1.442695, %v348_v24  ;;  %v1299_v33 = vpop.f32.mrb[12].mxu0  ;;  %v1358_v34 = vpack.i.bf16 %v1718_v29, %v1715_v28 }
  0xf6   :  { %v1480_v37 = vpop.eup %1479  ;;  %v1723_v38 = vadd.f32 %v1299_v33, %v142_v30  ;;  %v308_v39 = vpop.f32.mrb[13].mxu0  ;;  %v1739_v63 = vsel %vm326_vm3, %v1676_v40, %v1171_v42 }
  0xf7   :  { %v1482_v41 = vpop.eup %1481  ;;  %1491 = vpow2.f32 %v373_v32  ;;  %v1726_v43 = vadd.f32 %v308_v39, %v132_v9  ;;  %v1300_v44 = vpop.f32.mrb[14].mxu0  ;;  %1359 = vrot.lane.b32.xlu0 %v1358_v34, %s1523_s3  ;;  %v1174_v50 = vadd.f32 -1.0, %v1480_v37 }
  0xf8   :  { %v1172_v45 = vadd.f32 -1.0, %v1482_v41  ;;  %v353_v46 = vmin.f32 %v1723_v38, 0.0  ;;  %v1731_v47 = vadd.f32 %v1300_v44, %v147_v35  ;;  %v311_v48 = vpop.f32.mrb[15].mxu0  ;;  %1493 = vpow2.f32 %v377_v31  ;;  %v72_v39 = vpop.permute.xlu1 %71 }
  0xf9   :  { %v1484_v49 = vpop.eup %1483  ;;  %v351_v52 = vmin.f32 %v1726_v43, 0.0  ;;  %v312_v54 = vadd.f32 %v311_v48, %v137_v17  ;;  %v1754_v40 = vsel %vm329_vm4, %v1682_v51, %v1174_v50  ;;  %vm335_vm12 = vcmp.gt.f32.partialorder %v1726_v43, 0.0 }
  0xfa   :  { %v1173_v55 = vadd.f32 -1.0, %v1484_v49  ;;  %v383_v57 = vmul.f32 1.442695, %v353_v46  ;;  %v354_v58 = vmin.f32 %v1731_v47, 0.0  ;;  %v1486_v59 = vpop.eup %1485  ;;  %v1744_v0 = vsel %vm327_vm5, %v1684_v53, %v1172_v45 }
  0xfb   :  { %v379_v61 = vmul.f32 1.442695, %v351_v52  ;;  %v352_v62 = vmin.f32 %v312_v54, 0.0  ;;  %v1363_v2 = vpack.i.bf16 %v1744_v0, %v1739_v63  ;;  %v1175_v6 = vadd.f32 -1.0, %v1486_v59 }
  0xfc   :  { %1495 = vpow2.f32 %v383_v57  ;;  %v385_v1 = vmul.f32 1.442695, %v354_v58  ;;  %v1749_v3 = vsel %vm328_vm6, %v1690_v60, %v1173_v55  ;;  %vm337_vm13 = vcmp.gt.f32.partialorder %v1723_v38, 0.0 }
  0xfd   :  { %1497 = vpow2.f32 %v379_v61  ;;  %v381_v4 = vmul.f32 1.442695, %v352_v62  ;;  %1364 = vrot.lane.b32.xlu1 %v1363_v2, %s1523_s3  ;;  %v1368_v53 = vpack.i.bf16 %v1754_v40, %v1749_v3  ;;  %v1763_v12 = vsel %vm330_vm7, %v1687_v56, %v1175_v6 }
  0xfe   :  { %v1488_v5 = vpop.eup %1487  ;;  %1499 = vpow2.f32 %v385_v1  ;;  %vm338_vm14 = vcmp.gt.f32.partialorder %v1731_v47, 0.0  ;;  %vm336_vm15 = vcmp.gt.f32.partialorder %v312_v54, 0.0  ;;  %v261_v41 = vadd.f32 %v1673_v36, %v72_v39 }
  0xff   :  { %v1490_v8 = vpop.eup %1489  ;;  %1501 = vpow2.f32 %v381_v4  ;;  %v1178_v9 = vadd.f32 -1.0, %v1488_v5  ;;  %1369 = vrot.lane.b32.xlu0 %v1368_v53, %s1523_s3 }
 0x100   :  { %v1176_v60 = vadd.f32 -1.0, %v1490_v8  ;;  %vm323_vm2 = vcmp.gt.f32.partialorder %v261_v41, 0.0 }
 0x101   :  { %v1492_v11 = vpop.eup %1491  ;;  %v1776_v18 = vsel %vm333_vm9, %v1697_v7, %v1178_v9 }
 0x102   :  { %v1177_v51 = vadd.f32 -1.0, %v1492_v11  ;;  %v1766_v13 = vsel %vm331_vm8, %v1699_v10, %v1176_v60  ;;  %v1494_v15 = vpop.eup %1493 }
 0x103   :  { %v1373_v16 = vpack.i.bf16 %v1766_v13, %v1763_v12  ;;  %v1179_v20 = vadd.f32 -1.0, %v1494_v15 }
 0x104   :  { %v1773_v17 = vsel %vm332_vm10, %v1705_v19, %v1177_v51 }
 0x105   :  { %1374 = vrot.lane.b32.xlu1 %v1373_v16, %s1523_s3  ;;  %v1378_v56 = vpack.i.bf16 %v1776_v18, %v1773_v17  ;;  %v1785_v26 = vsel %vm334_vm11, %v1702_v14, %v1179_v20  ;;  %vm748_vm11 = vcmask 580608  }
 0x106   :  { %v1496_v10 = vpop.eup %1495 }
 0x107   :  { %v1498_v21 = vpop.eup %1497  ;;  %1379 = vrot.lane.b32.xlu0 %v1378_v56, %s1523_s3  ;;  %v1182_v23 = vadd.f32 -1.0, %v1496_v10 }
 0x108   :  { %v1500_v22 = vpop.eup %1499  ;;  %v1180_v24 = vadd.f32 -1.0, %v1498_v21 }
 0x109   :  { %v1502_v25 = vpop.eup %1501  ;;  %v1183_v7 = vadd.f32 -1.0, %v1500_v22  ;;  %v1797_v33 = vsel %vm337_vm13, %v1723_v38, %v1182_v23  ;;  %v339_v38 = vmin.f32 %v261_v41, 0.0  ;;  %vm781_vm13 = vcmask 588800  }
 0x10a   :  { %v1181_v19 = vadd.f32 -1.0, %v1502_v25  ;;  %v1788_v30 = vsel %vm335_vm12, %v1726_v43, %v1180_v24  ;;  %vm1527_vm12 = vmmov 0  }
 0x10b   :  { %v1383_v31 = vpack.i.bf16 %v1788_v30, %v1785_v26  ;;  %v1800_v34 = vsel %vm338_vm14, %v1731_v47, %v1183_v7  ;;  %v355_v42 = vmul.f32 1.442695, %v339_v38  ;;  %1339 = vmatprep.mubr.msk.bf16.mxu0 %vm1527_vm12, %v1522_v27  ;;  %vm784_vm14 = vcmask 719872  }
 0x10c   :  { %v1794_v32 = vsel %vm336_vm15, %v312_v54, %v1181_v19  ;;  %v1393_v37 = vpack.i.bf16 %v1522_v27, %v1800_v34  ;;  %vm1040_vm15 = vcmask 637952  }
 0x10d   :  { %1384 = vrot.lane.b32.xlu1 %v1383_v31, %s1523_s3  ;;  %v1388_v14 = vpack.i.bf16 %v1797_v33, %v1794_v32  ;;  %1503 = vpow2.f32 %v355_v42 }
 0x10f   :  { %1389 = vrot.lane.b32.xlu0 %v1388_v14, %s1523_s3 }
 0x111   :  { %1394 = vrot.lane.b32.xlu1 %v1393_v37, %s1523_s3  ;;  %v1184_v37 = vld [vmem:[%s2006_s4] ss:$0 sm:$0xff]  ;;  %s1524_s4 = smov 127  }
 0x117   :  { %v1504_v35 = vpop.eup %1503 }
 0x118   :  { %v1168_v43 = vadd.f32 -1.0, %v1504_v35 }
 0x11a   :  { %v403_v47 = vsel %vm323_vm2, %v261_v41, %v1168_v43  ;;  %vm1101_vm2 = vcmask 654336  }
 0x169   :  { %v1360_v44 = vpop.permute.xlu0 %1359 }
 0x16a   :  { %v1362_v45 = vunpack.i.h.bf16 %v1360_v44  ;;  %v1361_v46 = vunpack.i.l.bf16 %v1360_v44 }
 0x16c   :  { %v484_v48 = vsel %vm483_vm1, %v403_v47, %v1361_v46  ;;  %v485_v49 = vsel %vm483_vm1, %v1715_v28, %v1362_v45 }
 0x16d   :  { %v500_v50 = vpack.c.bf16 %v485_v49, %v484_v48 }
 0x16f   :  { %1305 = vmatprep.mubr.msk.bf16.mxu1 %vm201_vm0, %v500_v50  ;;  %v1365_v36 = vpop.permute.xlu1 %1364 }
 0x170   :  { %v1367_v52 = vunpack.i.h.bf16 %v1365_v36  ;;  %v1366_v54 = vunpack.i.l.bf16 %v1365_v36 }
 0x171   :  { %v1370_v55 = vpop.permute.xlu0 %1369 }
 0x172   :  { %v487_v57 = vsel %vm483_vm1, %v1739_v63, %v1367_v52  ;;  %v486_v58 = vsel %vm483_vm1, %v1718_v29, %v1366_v54  ;;  %v1372_v59 = vunpack.i.h.bf16 %v1370_v55  ;;  %v1371_v61 = vunpack.i.l.bf16 %v1370_v55 }
 0x173   :  { %v501_v62 = vpack.c.bf16 %v487_v57, %v486_v58 }
 0x174   :  { %v489_v1 = vsel %vm483_vm1, %v1749_v3, %v1372_v59  ;;  %v488_v28 = vsel %vm483_vm1, %v1744_v0, %v1371_v61 }
 0x175   :  { %v502_v2 = vpack.c.bf16 %v489_v1, %v488_v28  ;;  %1306 = vmatmul.mubr.msk.bf16.vlgmr.msra.gmra.mrb[0].mxu1 %vm201_vm0, %v501_v62 }
 0x177   :  { %v1375_v4 = vpop.permute.xlu1 %1374  ;;  %1309 = vmatprep.mubr.msk.bf16.mxu1 %vm201_vm0, %v502_v2 }
 0x178   :  { %v1377_v5 = vunpack.i.h.bf16 %v1375_v4  ;;  %v1376_v6 = vunpack.i.l.bf16 %v1375_v4 }
 0x179   :  { %v1380_v63 = vpop.permute.xlu0 %1379 }
 0x17a   :  { %v491_v29 = vsel %vm483_vm1, %v1763_v12, %v1377_v5  ;;  %v490_v53 = vsel %vm483_vm1, %v1754_v40, %v1376_v6  ;;  %v1382_v8 = vunpack.i.h.bf16 %v1380_v63  ;;  %v1381_v3 = vunpack.i.l.bf16 %v1380_v63 }
 0x17b   :  { %v503_v9 = vpack.c.bf16 %v491_v29, %v490_v53 }
 0x17c   :  { %v493_v0 = vsel %vm483_vm1, %v1773_v17, %v1382_v8  ;;  %v492_v60 = vsel %vm483_vm1, %v1766_v13, %v1381_v3 }
 0x17d   :  { %v504_v11 = vpack.c.bf16 %v493_v0, %v492_v60  ;;  %1310 = vmatmul.mubr.msk.bf16.gmra.mrb[4].mxu1 %vm201_vm0, %v503_v9 }
 0x17f   :  { %v1385_v51 = vpop.permute.xlu1 %1384  ;;  %1313 = vmatprep.mubr.msk.bf16.mxu1 %vm201_vm0, %v504_v11 }
 0x180   :  { %v1387_v15 = vunpack.i.h.bf16 %v1385_v51  ;;  %v1386_v12 = vunpack.i.l.bf16 %v1385_v51 }
 0x181   :  { %v1390_v16 = vpop.permute.xlu0 %1389 }
 0x182   :  { %v495_v40 = vsel %vm483_vm1, %v1785_v26, %v1387_v15  ;;  %v494_v56 = vsel %vm483_vm1, %v1776_v18, %v1386_v12  ;;  %v1392_v10 = vunpack.i.h.bf16 %v1390_v16  ;;  %v1391_v17 = vunpack.i.l.bf16 %v1390_v16 }
 0x183   :  { %v505_v20 = vpack.c.bf16 %v495_v40, %v494_v56  ;;  %v1395_v21 = vpop.permute.xlu1 %1394 }
 0x184   :  { %v497_v13 = vsel %vm483_vm1, %v1794_v32, %v1392_v10  ;;  %v496_v22 = vsel %vm483_vm1, %v1788_v30, %v1391_v17  ;;  %v1397_v24 = vunpack.i.h.bf16 %v1395_v21  ;;  %v1396_v25 = vunpack.i.l.bf16 %v1395_v21 }
 0x185   :  { %v506_v23 = vpack.c.bf16 %v497_v13, %v496_v22  ;;  %1314 = vmatmul.mubr.msk.bf16.gmra.mrb[8].mxu1 %vm201_vm0, %v505_v20 }
 0x186   :  { %v499_v18 = vsel %vm483_vm1, %v1800_v34, %v1397_v24  ;;  %v498_v7 = vsel %vm483_vm1, %v1797_v33, %v1396_v25 }
 0x187   :  { %1317 = vmatprep.mubr.msk.bf16.mxu1 %vm201_vm0, %v506_v23  ;;  %v507_v19 = vpack.c.bf16 %v499_v18, %v498_v7 }
 0x18d   :  { %1318 = vmatmul.mubr.msk.bf16.gmra.mrb[12].mxu1 %vm201_vm0, %v507_v19  ;;  %v1450_v19 = vld [vmem:[%s2007_s5 + $0x40] sm:$0xff]  }
 0x18e   :  { %1250 = vmatprep.subr.bf16.mxu1 %v1450_v19 }
 0x248   :  { %v1307_v26 = vpop.f32.mrb[0].mxu1 }
 0x249   :  { %v589_v31 = vpop.f32.mrb[1].mxu1  ;;  %v1451_v26 = vld [vmem:[%s2007_s5] sm:$0xff]  }
 0x24a   :  { %v1308_v32 = vpop.f32.mrb[2].mxu1  ;;  %v1854_v54 = vadd.f32 %v1184_v37, %v589_v31  ;;  %1251 = vmatpush3.bf16.msra.mxu1 %v1451_v26 }
 0x24b   :  { %v592_v30 = vpop.f32.mrb[3].mxu1 }
 0x24c   :  { %v1852_v49 = vadd.f32 %v1184_v37, %v592_v30  ;;  %v652_v62 = vmin.f32 %v1854_v54, 0.0  ;;  %vm644_vm10 = vcmp.gt.f32.partialorder %v1854_v54, 0.0 }
 0x24e   :  { %v653_v58 = vmin.f32 %v1852_v49, 0.0  ;;  %v660_v3 = vmul.f32 1.442695, %v652_v62  ;;  %vm645_vm9 = vcmp.gt.f32.partialorder %v1852_v49, 0.0 }
 0x250   :  { %v1311_v14 = vpop.f32.mrb[4].mxu1  ;;  %v662_v5 = vmul.f32 1.442695, %v653_v58 }
 0x251   :  { %v603_v39 = vpop.f32.mrb[5].mxu1  ;;  %v1452_v14 = vld [vmem:[%s2007_s5 + $0x48] sm:$0xff]  }
 0x252   :  { %v604_v41 = vadd.f32 %v1184_v37, %v603_v39  ;;  %v1312_v38 = vpop.f32.mrb[6].mxu1  ;;  %v1453_v39 = vld [vmem:[%s2007_s5 + $0x8] sm:$0xff]   ;;  %1252 = vmatprep.subr.bf16.mxu1 %v1452_v14 }
 0x253   :  { %v606_v42 = vpop.f32.mrb[7].mxu1  ;;  %v1454_v38 = vld [vmem:[%s2007_s5 + $0x50] sm:$0xff]   ;;  %1253 = vmatpush3.bf16.msra.mxu1 %v1453_v39 }
 0x254   :  { %v654_v34 = vmin.f32 %v604_v41, 0.0  ;;  %v607_v35 = vadd.f32 %v1184_v37, %v606_v42  ;;  %vm646_vm3 = vcmp.gt.f32.partialorder %v604_v41, 0.0  ;;  %1254 = vmatprep.subr.bf16.mxu1 %v1454_v38 }
 0x256   :  { %v664_v43 = vmul.f32 1.442695, %v654_v34  ;;  %v655_v33 = vmin.f32 %v607_v35, 0.0  ;;  %vm647_vm4 = vcmp.gt.f32.partialorder %v607_v35, 0.0 }
 0x258   :  { %1505 = vpow2.f32 %v664_v43  ;;  %v666_v44 = vmul.f32 1.442695, %v655_v33  ;;  %v1315_v45 = vpop.f32.mrb[8].mxu1  ;;  %v1456_v43 = vld [vmem:[%s2007_s5 + $0x58] sm:$0xff]  }
 0x259   :  { %v617_v46 = vpop.f32.mrb[9].mxu1  ;;  %v1457_v33 = vld [vmem:[%s2007_s5 + $0x18] sm:$0xff]  }
 0x25a   :  { %1507 = vpow2.f32 %v666_v44  ;;  %v618_v47 = vadd.f32 %v1184_v37, %v617_v46  ;;  %v1316_v48 = vpop.f32.mrb[10].mxu1  ;;  %v1458_v44 = vld [vmem:[%s2007_s5 + $0x60] sm:$0xff]  }
 0x25b   :  { %v620_v50 = vpop.f32.mrb[11].mxu1  ;;  %v1459_v46 = vld [vmem:[%s2007_s5 + $0x20] sm:$0xff]   ;;  %v1461_v48 = vld [vmem:[%s2007_s5 + $0x28] sm:$0xff]  }
 0x25c   :  { %v656_v36 = vmin.f32 %v618_v47, 0.0  ;;  %v621_v52 = vadd.f32 %v1184_v37, %v620_v50  ;;  %vm648_vm5 = vcmp.gt.f32.partialorder %v618_v47, 0.0 }
 0x25e   :  { %v668_v55 = vmul.f32 1.442695, %v656_v36  ;;  %v657_v57 = vmin.f32 %v621_v52, 0.0  ;;  %vm649_vm6 = vcmp.gt.f32.partialorder %v621_v52, 0.0 }
 0x260   :  { %1509 = vpow2.f32 %v668_v55  ;;  %v670_v59 = vmul.f32 1.442695, %v657_v57  ;;  %v1319_v61 = vpop.f32.mrb[12].mxu1 }
 0x261   :  { %v631_v1 = vpop.f32.mrb[13].mxu1  ;;  %v1464_v61 = vld [vmem:[%s2007_s5 + $0x78] sm:$0xff]  }
 0x262   :  { %v1506_v28 = vpop.eup %1505  ;;  %1511 = vpow2.f32 %v670_v59  ;;  %v632_v2 = vadd.f32 %v1184_v37, %v631_v1  ;;  %v1320_v4 = vpop.f32.mrb[14].mxu1  ;;  %v1463_v59 = vld [vmem:[%s2007_s5 + $0x30] sm:$0xff]  }
 0x263   :  { %v1197_v6 = vadd.f32 -1.0, %v1506_v28  ;;  %v634_v63 = vpop.f32.mrb[15].mxu1  ;;  %1513 = vpow2.f32 %v662_v5  ;;  %v1465_v5 = vld [vmem:[%s2007_s5 + $0x38] sm:$0xff]  }
 0x264   :  { %v1508_v29 = vpop.eup %1507  ;;  %v658_v53 = vmin.f32 %v632_v2, 0.0  ;;  %v635_v8 = vadd.f32 %v1184_v37, %v634_v63  ;;  %vm650_vm7 = vcmp.gt.f32.partialorder %v632_v2, 0.0 }
 0x265   :  { %v1198_v9 = vadd.f32 -1.0, %v1508_v29  ;;  %v1858_v11 = vsel %vm646_vm3, %v604_v41, %v1197_v6 }
 0x266   :  { %v672_v0 = vmul.f32 1.442695, %v658_v53  ;;  %v659_v60 = vmin.f32 %v635_v8, 0.0  ;;  %vm651_vm8 = vcmp.gt.f32.partialorder %v635_v8, 0.0 }
 0x267   :  { %v1860_v51 = vsel %vm647_vm4, %v607_v35, %v1198_v9  ;;  %v1455_v35 = vld [vmem:[%s2007_s5 + $0x10] sm:$0xff]  }
 0x268   :  { %1515 = vpow2.f32 %v672_v0  ;;  %v674_v15 = vmul.f32 1.442695, %v659_v60  ;;  %v1398_v12 = vpack.i.bf16 %v1860_v51, %v1858_v11  ;;  %1255 = vmatpush3.bf16.msra.mxu1 %v1455_v35 }
 0x269   :  { %1517 = vpow2.f32 %v660_v3  ;;  %1256 = vmatprep.subr.bf16.mxu1 %v1456_v43  ;;  %v1466_v43 = vld [vmem:[%s2007_s5 + $0x80] sm:$0xff]  }
 0x26a   :  { %v1510_v16 = vpop.eup %1509  ;;  %1519 = vpow2.f32 %v674_v15  ;;  %1399 = vrot.lane.b32.xlu0 %v1398_v12, %s1524_s4 }
 0x26b   :  { %v1199_v40 = vadd.f32 -1.0, %v1510_v16 }
 0x26c   :  { %v1512_v56 = vpop.eup %1511  ;;  %1257 = vmatpush3.bf16.msra.mxu1 %v1457_v33 }
 0x26d   :  { %v1200_v10 = vadd.f32 -1.0, %v1512_v56  ;;  %v1866_v17 = vsel %vm648_vm5, %v618_v47, %v1199_v40  ;;  %v1514_v13 = vpop.eup %1513  ;;  %1258 = vmatprep.subr.bf16.mxu1 %v1458_v44  ;;  %v1460_v47 = vld [vmem:[%s2007_s5 + $0x68] sm:$0xff]  }
 0x26e   :  { %1404 = vrot.lane.b32.xlu0 %v1398_v12, %s1525_s20  ;;  %v1196_v18 = vadd.f32 -1.0, %v1514_v13 }
 0x26f   :  { %v1868_v20 = vsel %vm649_vm6, %v621_v52, %v1200_v10 }
 0x270   :  { %v1408_v21 = vpack.i.bf16 %v1868_v20, %v1866_v17  ;;  %v1894_v41 = vsel %vm645_vm9, %v1852_v49, %v1196_v18  ;;  %1259 = vmatpush3.bf16.msra.mxu1 %v1459_v46  ;;  %v1462_v49 = vld [vmem:[%s2007_s5 + $0x70] sm:$0xff]  }
 0x271   :  { %1260 = vmatprep.subr.bf16.mxu1 %v1460_v47 }
 0x272   :  { %v1516_v22 = vpop.eup %1515  ;;  %1409 = vrot.lane.b32.xlu1 %v1408_v21, %s1524_s4 }
 0x273   :  { %v1518_v23 = vpop.eup %1517  ;;  %v1201_v24 = vadd.f32 -1.0, %v1516_v22 }
 0x274   :  { %v1520_v25 = vpop.eup %1519  ;;  %v1195_v31 = vadd.f32 -1.0, %v1518_v23  ;;  %1261 = vmatpush3.bf16.msra.mxu1 %v1461_v48 }
 0x275   :  { %v1202_v7 = vadd.f32 -1.0, %v1520_v25  ;;  %v1880_v32 = vsel %vm650_vm7, %v632_v2, %v1201_v24  ;;  %1262 = vmatprep.subr.bf16.mxu1 %v1462_v49  ;;  %v1203_v49 = vld [vmem:[%s2008_s6] ss:$0 sm:$0xff] }
 0x276   :  { %1414 = vrot.lane.b32.xlu1 %v1408_v21, %s1525_s20  ;;  %v1903_v42 = vsel %vm644_vm10, %v1854_v54, %v1195_v31 }
 0x277   :  { %v1882_v30 = vsel %vm651_vm8, %v635_v8, %v1202_v7  ;;  %v1433_v34 = vpack.i.bf16 %v1894_v41, %v1903_v42 }
 0x278   :  { %v1423_v37 = vpack.i.bf16 %v1882_v30, %v1880_v32  ;;  %1263 = vmatpush3.bf16.msra.mxu1 %v1463_v59  ;;  %v1469_v59 = vld [vmem:[%s2009_s7 + $0x8] sm:$0xff]  }
 0x279   :  { %1264 = vmatprep.subr.bf16.mxu1 %v1464_v61 }
 0x27a   :  { %1424 = vrot.lane.b32.xlu1 %v1423_v37, %s1525_s20  ;;  %1419 = vrot.lane.b32.xlu0 %v1423_v37, %s1524_s4 }
 0x27c   :  { %1265 = vmatpush3.bf16.msra.mxu1 %v1465_v5  ;;  %v1472_v5 = vld [vmem:[%s2009_s7 + $0x20] sm:$0xff]  }
 0x27d   :  { %1321 = vmatprep.subr.bf16.mxu1 %v1522_v27 }
 0x27e   :  { %1434 = vrot.lane.b32.xlu1 %v1433_v34, %s1525_s20  ;;  %1429 = vrot.lane.b32.xlu0 %v1433_v34, %s1524_s4 }
 0x2dc   :  { %v1400_v45 = vpop.permute.xlu0 %1399 }
 0x2dd   :  { %v1402_v36 = vunpack.i.h.bf16 %v1400_v45  ;;  %v1401_v52 = vunpack.i.l.bf16 %v1400_v45 }
 0x2e0   :  { %v1405_v50 = vpop.permute.xlu0 %1404 }
 0x2e1   :  { %v1407_v54 = vunpack.i.h.bf16 %v1405_v50  ;;  %v1406_v55 = vunpack.i.l.bf16 %v1405_v50 }
 0x2e3   :  { %v751_v57 = vsel %vm748_vm11, %v1401_v52, %v1406_v55  ;;  %v752_v58 = vsel %vm748_vm11, %v1402_v36, %v1407_v54 }
 0x2e4   :  { %v1410_v62 = vpop.permute.xlu1 %1409  ;;  %v759_v1 = vmax.f32 %v1858_v11, %v751_v57  ;;  %v760_v28 = vmax.f32 %v1860_v51, %v752_v58  ;;  %v1468_v58 = vld [vmem:[%s2009_s7] sm:$0xff]  }
 0x2e5   :  { %v1412_v6 = vunpack.i.h.bf16 %v1410_v62  ;;  %v1411_v63 = vunpack.i.l.bf16 %v1410_v62  ;;  %1330 = vmatpush3.bf16.msra.mxu0 %v1468_v58 }
 0x2e6   :  { %v766_v2 = vmax.f32 %v759_v1, %v760_v28  ;;  %1331 = vmatprep.subr.bf16.mxu0 %v1522_v27  ;;  %v1470_v28 = vld [vmem:[%s2009_s7 + $0x10] sm:$0xff]  }
 0x2e8   :  { %v1415_v4 = vpop.permute.xlu1 %1414  ;;  %770 = vrot.lane.b32.xlu0 %v766_v2, %s1526_s27 }
 0x2e9   :  { %v1417_v29 = vunpack.i.h.bf16 %v1415_v4  ;;  %v1416_v53 = vunpack.i.l.bf16 %v1415_v4  ;;  %1332 = vmatpush3.bf16.msra.mxu0 %v1469_v59  ;;  %v1471_v4 = vld [vmem:[%s2009_s7 + $0x18] sm:$0xff]  }
 0x2ea   :  { %1333 = vmatprep.subr.bf16.mxu0 %v1522_v27 }
 0x2eb   :  { %v753_v8 = vsel %vm748_vm11, %v1411_v63, %v1416_v53  ;;  %v754_v3 = vsel %vm748_vm11, %v1412_v6, %v1417_v29 }
 0x2ec   :  { %v1425_v9 = vpop.permute.xlu1 %1424  ;;  %v1420_v0 = vpop.permute.xlu0 %1419  ;;  %v761_v60 = vmax.f32 %v1866_v17, %v753_v8  ;;  %v762_v11 = vmax.f32 %v1868_v20, %v754_v3 }
 0x2ed   :  { %v1427_v51 = vunpack.i.h.bf16 %v1425_v9  ;;  %v1426_v15 = vunpack.i.l.bf16 %v1425_v9  ;;  %v1422_v12 = vunpack.i.h.bf16 %v1420_v0  ;;  %v1421_v16 = vunpack.i.l.bf16 %v1420_v0  ;;  %1334 = vmatpush3.bf16.msra.mxu0 %v1470_v28 }
 0x2ee   :  { %v767_v40 = vmax.f32 %v761_v60, %v762_v11  ;;  %1335 = vmatprep.subr.bf16.mxu0 %v1522_v27 }
 0x2ef   :  { %v756_v56 = vsel %vm748_vm11, %v1422_v12, %v1427_v51  ;;  %v755_v10 = vsel %vm748_vm11, %v1421_v16, %v1426_v15 }
 0x2f0   :  { %774 = vrot.lane.b32.xlu1 %v767_v40, %s1523_s3  ;;  %v763_v21 = vmax.f32 %v1880_v32, %v755_v10  ;;  %v764_v13 = vmax.f32 %v1882_v30, %v756_v56  ;;  %v1435_v20 = vpop.permute.xlu1 %1434  ;;  %v1430_v22 = vpop.permute.xlu0 %1429 }
 0x2f1   :  { %v1437_v23 = vunpack.i.h.bf16 %v1435_v20  ;;  %v1436_v24 = vunpack.i.l.bf16 %v1435_v20  ;;  %v1432_v25 = vunpack.i.h.bf16 %v1430_v22  ;;  %v1431_v18 = vunpack.i.l.bf16 %v1430_v22  ;;  %1336 = vmatpush3.bf16.msra.mxu0 %v1471_v4 }
 0x2f2   :  { %v768_v17 = vmax.f32 %v763_v21, %v764_v13  ;;  %1337 = vmatprep.subr.bf16.mxu0 %v1522_v27 }
 0x2f3   :  { %v750_v7 = vsel %vm748_vm11, %v1432_v25, %v1437_v23  ;;  %v749_v19 = vsel %vm748_vm11, %v1431_v18, %v1436_v24 }
 0x2f4   :  { %778 = vrot.lane.b32.xlu0 %v768_v17, %s1528_s30  ;;  %v758_v26 = vmax.f32 %v1894_v41, %v750_v7  ;;  %v757_v31 = vmax.f32 %v1903_v42, %v749_v19  ;;  %v1467_v41 = vld [vmem:[%s2007_s5 + $0x88] sm:$0xff]   ;;  %s1529_s5 = smov 79  }
 0x2f5   :  { %1338 = vmatpush3.bf16.msra.mxu0 %v1472_v5 }
 0x2f6   :  { %v765_v14 = vmax.f32 %v757_v31, %v758_v26 }
 0x35a   :  { %v771_v32 = vpop.permute.xlu0 %770 }
 0x35b   :  { %v782_v37 = vsel %vm781_vm13, %v765_v14, %v771_v32 }
 0x35c   :  { %v786_v33 = vpack.c.bf16 %v782_v37, %v782_v37 }
 0x362   :  { %v775_v30 = vpop.permute.xlu1 %774 }
 0x363   :  { %v783_v39 = vsel %vm483_vm1, %v771_v32, %v775_v30  ;;  %vm1050_vm1 = vcmask 490496  }
 0x366   :  { %v779_v38 = vpop.permute.xlu0 %778 }
 0x367   :  { %v785_v34 = vsel %vm784_vm14, %v783_v39, %v779_v38  ;;  %v788_v42 = vpack.c.bf16 %v779_v38, %v779_v38 }
 0x368   :  { %v787_v35 = vpack.c.bf16 %v785_v34, %v785_v34 }
 0x36a   :  { %975 = vmatprep.mubr.bf16.mxu1 %v787_v35 }
 0x36b   :  { %976 = vmatmul.mubr.bf16.vlgmr.msra.gmra.mrb[16].mxu1 %v786_v33 }
 0x36c   :  { %1322 = vmatpush3.bf16.msra.mxu1 %v1466_v43  ;;  %1325 = vmatprep.mubr.msk.bf16.mxu1 %vm1527_vm12, %v1522_v27 }
 0x36d   :  { %1323 = vmatprep.subr.bf16.mxu1 %v1522_v27  ;;  %v1223_v27 = vld [vmem:[%s2010_s8] ss:$0 sm:$0xff] }
 0x370   :  { %1324 = vmatpush3.bf16.msra.mxu1 %v1467_v41 }
 0x373   :  { %1326 = vmatmul.mubr.msk.bf16.vlgmr.msra.gmra.mrb[20].mxu1 %vm201_vm0, %v788_v42  ;;  %vm1030_vm0 = vcmask 646144  }
 0x43e   :  { %v1266_v44 = vpop.f32.mrb[16].mxu1 }
 0x43f   :  { %v1267_v45 = vpop.f32.mrb[17].mxu1 }
 0x440   :  { %v1268_v46 = vadd.f32 %v1267_v45, %v1266_v44  ;;  %v1269_v47 = vpop.f32.mrb[18].mxu1 }
 0x441   :  { %v1270_v48 = vpop.f32.mrb[19].mxu1 }
 0x442   :  { %v978_v50 = vadd.f32 %v1268_v46, %v1203_v49 }
 0x446   :  { %v1017_v36 = vpop.f32.mrb[20].mxu1 }
 0x447   :  { %v1018_v52 = vadd.f32 %v1017_v36, %v978_v50  ;;  %v1327_v54 = vpop.f32.mrb[21].mxu1 }
 0x448   :  { %v1020_v55 = vpop.f32.mrb[22].mxu1 }
 0x449   :  { %v1328_v57 = vpop.f32.mrb[23].mxu1  ;;  %1027 = vrot.lane.b32.xlu0 %v1018_v52, %s1529_s5  ;;  %1024 = vrot.lane.b32.xlu1 %v1018_v52, %s1524_s4  ;;  %s1530_s4 = smov 78  }
 0x4bb   :  { %v1028_v61 = vpop.permute.xlu0 %1027  ;;  %v1025_v62 = vpop.permute.xlu1 %1024 }
 0x4bc   :  { %v1031_v1 = vsel %vm1030_vm0, %v1025_v62, %v1028_v61 }
 0x4bd   :  { %v1032_v2 = vmax.f32 %v1018_v52, %v1031_v1 }
 0x4bf   :  { %1037 = vrot.lane.b32.xlu0 %v1032_v2, %s1530_s4  ;;  %1034 = vrot.lane.b32.xlu1 %v1032_v2, %s1531_s18 }
 0x531   :  { %v1038_v6 = vpop.permute.xlu0 %1037  ;;  %v1035_v63 = vpop.permute.xlu1 %1034 }
 0x532   :  { %v1041_v29 = vsel %vm1040_vm15, %v1035_v63, %v1038_v6 }
 0x533   :  { %v1042_v53 = vmax.f32 %v1032_v2, %v1041_v29 }
 0x535   :  { %1047 = vrot.lane.b32.xlu0 %v1042_v53, %s1532_s22  ;;  %1044 = vrot.lane.b32.xlu1 %v1042_v53, %s1533_s23 }
 0x5a7   :  { %v1048_v8 = vpop.permute.xlu0 %1047  ;;  %v1045_v3 = vpop.permute.xlu1 %1044 }
 0x5a8   :  { %v1051_v9 = vsel %vm1050_vm1, %v1045_v3, %v1048_v8 }
 0x5a9   :  { %v1052_v0 = vmax.f32 %v1042_v53, %v1051_v9 }
 0x5ab   :  { %v1053_v60 = vpack.c.bf16 %v1052_v0, %v1052_v0 }
 0x5ad   :  { %1340 = vmatmul.mubr.msk.bf16.vlgmr.msra.gmra.mrb[16].mxu0 %vm1101_vm2, %v1053_v60 }
 0x680   :  { %v1139_v11 = vpop.f32.mrb[16].mxu0 }
 0x681   :  { %v1140_v51 = vadd.f32 %v1223_v27, %v1139_v11  ;;  %v1341_v15 = vpop.f32.mrb[17].mxu0 }
 0x682   :  { %v1142_v12 = vpop.f32.mrb[18].mxu0 }
 0x683   :  { %1145 = vst [vmem:[%s2011_s9] sm:$0xff] %v1140_v51  ;;  %v1342_v16 = vpop.f32.mrb[19].mxu0 }

</bundles_post_ra>
